<compile_context>
chip_gen: v5e
topology: v5e:2x2
jax: 0.10.0
libtpu: 0.0.40
codegen_flags: <defaults>
</compile_context>

<pallas_src>
import functools

import jax
import jax.numpy as jnp
from jax.experimental import pallas as pl
from jax.experimental.pallas import tpu as pltpu


_DILATIONS = (1, 2, 3)          # branch dilations, fixed by the MAC module
_TAPS = 3                       # conv kernel size along its active axis
_PMAX = max(_DILATIONS)         # max 'same' padding (3)


def _round_up(a, b):
    return (a + b - 1) // b * b


# ---------------------------------------------------------------------------
# Fused kernel: one batch element per grid step.
# ---------------------------------------------------------------------------
def _mac_kernel(x_ref, wpos_ref, w1_ref, s1_ref, w2_ref, s2_ref, o_ref,
                xpad_ref, xp1_ref, ypad_ref, xp2_ref,
                *, C1, C1p, C2, C2p, W, L):
    P1 = _PMAX
    P2 = _PMAX * W

    # ---- stage-1 patch assembly: union of 7 W-offsets of x --------------------
    xpad_ref[...] = jnp.zeros_like(xpad_ref)              # zero pads + unused rows
    xpad_ref[0:C1, P1:P1 + L] = x_ref[0].astype(jnp.float32)   # x, (C1, H*W)
    wpos = wpos_ref[...]                                    # (1, L) int32: w = m mod W

    for slot in range(2 * P1 + 1):                          # offset = slot - 3
        off = slot - P1
        slab = xpad_ref[:, slot:slot + L]                   # (C1p, L): x[., m + off]
        if off != 0:
            # zero taps that fall outside the row ('same' padding along W)
            valid = jnp.logical_and(wpos + off >= 0, wpos + off < W)
            slab = slab * valid.astype(jnp.float32)
        xp1_ref[slot * C1p:(slot + 1) * C1p, :] = slab

    # ---- stage 1: all three (1,3) convs + folded BN + ReLU, one MXU dot -------
    y1 = jnp.dot(w1_ref[...], xp1_ref[...], preferred_element_type=jnp.float32)
    y1 = jnp.maximum(y1 + s1_ref[...], 0.0)                 # (3*C2p, L)

    # ---- stage-2 patch assembly: per-branch H-offsets of y1 -------------------
    ypad_ref[...] = jnp.zeros_like(ypad_ref)                # zero edges = 'same' along H
    ypad_ref[:, P2:P2 + L] = y1
    for j, d in enumerate(_DILATIONS):
        for t in range(_TAPS):
            start = P2 + (t - 1) * d * W
            row = (j * _TAPS + t) * C2p
            xp2_ref[row:row + C2p, :] = ypad_ref[j * C2p:(j + 1) * C2p,
                                                 start:start + L]

    # ---- stage 2: block-diagonal dot + folded BN + ReLU + branch sum ----------
    r = jnp.dot(w2_ref[...], xp2_ref[...], preferred_element_type=jnp.float32)
    r = jnp.maximum(r + s2_ref[...], 0.0)                   # (3*C2p, L)
    out = r[0:C2p] + r[C2p:2 * C2p] + r[2 * C2p:3 * C2p]    # x1 + x2 + x3
    o_ref[0] = out[0:C2].astype(o_ref.dtype)


# ---------------------------------------------------------------------------
# Host-side glue: BN/bias folding + weight packing into the two stacked GEMMs.
# ---------------------------------------------------------------------------
def _fold_conv_bn(p, eps):
    """Fold conv bias + eval-mode BN into (scaled weight, per-channel shift)."""
    scale = (p["gamma"] / jnp.sqrt(p["var"] + eps)).astype(jnp.float32)
    wf = p["weight"].astype(jnp.float32) * scale[:, None, None, None]
    shift = (p["beta"] + (p["bias"] - p["mean"]) * scale).astype(jnp.float32)
    return wf, shift


def _pack_mac_params(params, C1, C2, eps):
    """Pack the 6 folded convs into one stacked stage-1 weight (rows grouped by
    branch, columns = tap-slot-major union-of-7-taps) and one block-diagonal
    stage-2 weight (columns = branch/tap-major)."""
    C1p, C2p = _round_up(C1, 8), _round_up(C2, 8)
    n_slots = 2 * _PMAX + 1
    w1 = jnp.zeros((3 * C2p, n_slots * C1p), jnp.float32)
    s1 = jnp.zeros((3 * C2p, 1), jnp.float32)
    w2 = jnp.zeros((3 * C2p, 3 * _TAPS * C2p), jnp.float32)
    s2 = jnp.zeros((3 * C2p, 1), jnp.float32)
    for b, d in enumerate(_DILATIONS):
        wf, sh = _fold_conv_bn(params[f"conv{b + 1}_1"], eps)      # (C2, C1, 1, 3)
        for t in range(_TAPS):
            slot = (t - 1) * d + _PMAX                             # W offset -> slot
            w1 = w1.at[b * C2p:b * C2p + C2,
                       slot * C1p:slot * C1p + C1].set(wf[:, :, 0, t])
        s1 = s1.at[b * C2p:b * C2p + C2, 0].set(sh)
        wf2, sh2 = _fold_conv_bn(params[f"conv{b + 1}_2"], eps)    # (C2, C2, 3, 1)
        for t in range(_TAPS):
            col = (b * _TAPS + t) * C2p
            w2 = w2.at[b * C2p:b * C2p + C2, col:col + C2].set(wf2[:, :, t, 0])
        s2 = s2.at[b * C2p:b * C2p + C2, 0].set(sh2)
    return w1, s1, w2, s2, C1p, C2p


def _vmem_limit_bytes(C1p, C2p, L, W):
    """Footprint-based VMEM limit (v7x has only 64 MiB/TC; don't hard-code 48)."""
    f32 = 4
    n_slots = 2 * _PMAX + 1
    scratch = (C1p * (L + 2 * _PMAX) + n_slots * C1p * L
               + 3 * C2p * (L + 2 * _PMAX * W) + 3 * _TAPS * C2p * L) * f32
    blocks = 2 * ((C1p + C2p + 1) * L
                  + 3 * C2p * (n_slots * C1p + 3 * _TAPS * C2p + 2)) * f32
    interm = 3 * (3 * C2p) * L * f32
    est = scratch + blocks + interm + (2 << 20)
    return int(min(max(est, 16 * 2 ** 20), 128 * 2 ** 20))


def mac_in_conv_forward(x, params, *, eps=1e-5):
    """MACInConv forward: x (N, C1, H, W) -> (N, C2, H, W). BN folded (eval mode)."""
    N, C1, H, W = x.shape
    C2 = params["conv1_1"]["weight"].shape[0]
    L = H * W
    w1, s1, w2, s2, C1p, C2p = _pack_mac_params(params, C1, C2, eps)
    x_flat = x.reshape(N, C1, L)                         # lane axis = h*W + w (free reshape)
    wpos = (jnp.arange(L, dtype=jnp.int32) % W).reshape(1, L)
    n_slots = 2 * _PMAX + 1

    kernel = functools.partial(_mac_kernel, C1=C1, C1p=C1p, C2=C2, C2p=C2p, W=W, L=L)

    out = pl.pallas_call(
        kernel,
        out_shape=jax.ShapeDtypeStruct((N, C2, L), x.dtype),
        grid_spec=pltpu.PrefetchScalarGridSpec(
            num_scalar_prefetch=0,
            grid=(N,),                                    # >=2 steps: both TCs on v7x
            in_specs=[
                pl.BlockSpec((1, C1, L), lambda n: (n, 0, 0)),               # x
                pl.BlockSpec((1, L), lambda n: (0, 0)),                      # w positions
                pl.BlockSpec((3 * C2p, n_slots * C1p), lambda n: (0, 0)),    # W1 (stacked)
                pl.BlockSpec((3 * C2p, 1), lambda n: (0, 0)),                # shift1
                pl.BlockSpec((3 * C2p, 3 * _TAPS * C2p), lambda n: (0, 0)),  # W2 (blockdiag)
                pl.BlockSpec((3 * C2p, 1), lambda n: (0, 0)),                # shift2
            ],
            out_specs=pl.BlockSpec((1, C2, L), lambda n: (n, 0, 0)),
            scratch_shapes=[
                pltpu.VMEM((C1p, L + 2 * _PMAX), jnp.float32),           # zero-padded x
                pltpu.VMEM((n_slots * C1p, L), jnp.float32),             # stage-1 patch stack
                pltpu.VMEM((3 * C2p, L + 2 * _PMAX * W), jnp.float32),   # zero-padded y1
                pltpu.VMEM((3 * _TAPS * C2p, L), jnp.float32),           # stage-2 patch stack
            ],
        ),
        compiler_params=pltpu.CompilerParams(
            dimension_semantics=("parallel",),
            vmem_limit_bytes=_vmem_limit_bytes(C1p, C2p, L, W),
        ),
    )(x_flat, wpos, w1, s1, w2, s2)
    return out.reshape(N, C2, H, W)


# ---------------------------------------------------------------------------
# Pure-JAX reference (lax.conv) for verification.
# ---------------------------------------------------------------------------
def _conv_bn_relu_ref(x, p, *, dilation, eps=1e-5):
    kh, kw = p["weight"].shape[2:]
    dh, dw = dilation
    pad = ((dh * (kh - 1) // 2,) * 2, (dw * (kw - 1) // 2,) * 2)
    y = jax.lax.conv_general_dilated(
        x, p["weight"], window_strides=(1, 1), padding=pad,
        rhs_dilation=dilation, dimension_numbers=("NCHW", "OIHW", "NCHW"),
        precision=jax.lax.Precision.HIGHEST)
    y = y + p["bias"][None, :, None, None]
    scale = p["gamma"] / jnp.sqrt(p["var"] + eps)
    y = y * scale[None, :, None, None] + \
        (p["beta"] - p["mean"] * scale)[None, :, None, None]
    return jnp.maximum(y, 0.0)


def mac_in_conv_ref(x, params, *, eps=1e-5):
    outs = []
    for b, d in enumerate(_DILATIONS):
        y = _conv_bn_relu_ref(x, params[f"conv{b + 1}_1"], dilation=(1, d), eps=eps)
        y = _conv_bn_relu_ref(y, params[f"conv{b + 1}_2"], dilation=(d, 1), eps=eps)
        outs.append(y)
    return outs[0] + outs[1] + outs[2]


if __name__ == "__main__":
    key = jax.random.PRNGKey(0)
    N, in_ch, out_ch, H, W = 2, 4, 8, 16, 16

    def make_conv_params(k, c_in, c_out, kh, kw):
        ks = jax.random.split(k, 6)
        fan_in = c_in * kh * kw
        return dict(
            weight=jax.random.normal(ks[0], (c_out, c_in, kh, kw), jnp.float32)
            / jnp.sqrt(fan_in),
            bias=0.05 * jax.random.normal(ks[1], (c_out,), jnp.float32),
            gamma=1.0 + 0.1 * jax.random.normal(ks[2], (c_out,), jnp.float32),
            beta=0.1 * jax.random.normal(ks[3], (c_out,), jnp.float32),
            mean=0.1 * jax.random.normal(ks[4], (c_out,), jnp.float32),
            var=jax.nn.softplus(jax.random.normal(ks[5], (c_out,), jnp.float32)) + 0.5,
        )

    kx, kp = jax.random.split(key)
    x = jax.random.normal(kx, (N, in_ch, H, W), jnp.float32)

    names = ["conv1_1", "conv1_2", "conv2_1", "conv2_2", "conv3_1", "conv3_2"]
    shapes = [(in_ch, out_ch, 1, 3), (out_ch, out_ch, 3, 1)] * 3
    params = {}
    for name, (ci, co, kh, kw), k in zip(names, shapes, jax.random.split(kp, 6)):
        params[name] = make_conv_params(k, ci, co, kh, kw)

    out = mac_in_conv_forward(x, params)
    out = jax.block_until_ready(out)

    ref = mac_in_conv_ref(x, params)
    assert out.shape == ref.shape == (N, out_ch, H, W), (out.shape, ref.shape)
    assert jnp.allclose(out, ref, atol=1e-3, rtol=1e-3), \
        float(jnp.max(jnp.abs(out - ref)))

    print("KERNEL_OK")
</pallas_src>

<mosaic_0001>
module attributes {stable_mosaic.version = 11 : i64} {
  func.func @_mac_kernel(%arg0: i32, %arg1: memref<1x4x256xf32, #tpu.memory_space<vmem>>, %arg2: memref<1x256xi32, #tpu.memory_space<vmem>>, %arg3: memref<24x56xf32, #tpu.memory_space<vmem>>, %arg4: memref<24x1xf32, #tpu.memory_space<vmem>>, %arg5: memref<24x72xf32, #tpu.memory_space<vmem>>, %arg6: memref<24x1xf32, #tpu.memory_space<vmem>>, %arg7: memref<1x8x256xf32, #tpu.memory_space<vmem>>, %arg8: memref<8x262xf32, #tpu.memory_space<vmem>>, %arg9: memref<56x256xf32, #tpu.memory_space<vmem>>, %arg10: memref<24x352xf32, #tpu.memory_space<vmem>>, %arg11: memref<72x256xf32, #tpu.memory_space<vmem>>) attributes {dimension_semantics = [#tpu.dimension_semantics<parallel>], iteration_bounds = array<i64: 2>, scalar_prefetch = 0 : i64, scratch_operands = 4 : i64, tpu.core_type = #tpu.core_type<tc>, window_params = [{transform_indices = @transform_0, window_bounds = array<i64: 1, 4, 256>}, {pipeline_mode = #tpu.pipeline_mode<synchronous>, transform_indices = @transform_1, window_bounds = array<i64: 1, 256>}, {pipeline_mode = #tpu.pipeline_mode<synchronous>, transform_indices = @transform_2, window_bounds = array<i64: 24, 56>}, {pipeline_mode = #tpu.pipeline_mode<synchronous>, transform_indices = @transform_3, window_bounds = array<i64: 24, 1>}, {pipeline_mode = #tpu.pipeline_mode<synchronous>, transform_indices = @transform_4, window_bounds = array<i64: 24, 72>}, {pipeline_mode = #tpu.pipeline_mode<synchronous>, transform_indices = @transform_5, window_bounds = array<i64: 24, 1>}, {transform_indices = @transform_6, window_bounds = array<i64: 1, 8, 256>}]} {
    %cst = arith.constant 0.000000e+00 : f32
    %0 = vector.broadcast %cst : f32 to vector<8x262xf32>
    %c0 = arith.constant 0 : index
    %c0_0 = arith.constant 0 : index
    %1 = vector.load %arg8[%c0, %c0_0] : memref<8x262xf32, #tpu.memory_space<vmem>>, vector<8x262xf32>
    tpu.vector_store %arg8[%c0, %c0_0], %0 {strides = array<i32>} : memref<8x262xf32, #tpu.memory_space<vmem>>, vector<8x262xf32>,
    %c0_1 = arith.constant 0 : index
    %c0_2 = arith.constant 0 : index
    %c0_3 = arith.constant 0 : index
    %2 = vector.load %arg1[%c0_1, %c0_2, %c0_3] : memref<1x4x256xf32, #tpu.memory_space<vmem>>, vector<1x4x256xf32>
    %3 = vector.shape_cast %2 : vector<1x4x256xf32> to vector<4x256xf32>
    %c0_4 = arith.constant 0 : index
    %c3 = arith.constant 3 : index
    %4 = vector.load %arg8[%c0_4, %c3] : memref<8x262xf32, #tpu.memory_space<vmem>>, vector<4x256xf32>
    tpu.vector_store %arg8[%c0_4, %c3], %3 {strides = array<i32>} : memref<8x262xf32, #tpu.memory_space<vmem>>, vector<4x256xf32>,
    %c0_5 = arith.constant 0 : index
    %c0_6 = arith.constant 0 : index
    %5 = vector.load %arg2[%c0_5, %c0_6] : memref<1x256xi32, #tpu.memory_space<vmem>>, vector<1x256xi32>
    %c0_7 = arith.constant 0 : index
    %c0_8 = arith.constant 0 : index
    %6 = vector.load %arg8[%c0_7, %c0_8] : memref<8x262xf32, #tpu.memory_space<vmem>>, vector<8x256xf32>
    %c-3_i32 = arith.constant -3 : i32
    %7 = vector.broadcast %c-3_i32 : i32 to vector<1x256xi32>
    %8 = arith.addi %5, %7 : vector<1x256xi32>
    %c0_i32 = arith.constant 0 : i32
    %9 = vector.broadcast %c0_i32 : i32 to vector<1x256xi32>
    %10 = arith.cmpi sge, %8, %9 : vector<1x256xi32>
    %c-3_i32_9 = arith.constant -3 : i32
    %11 = vector.broadcast %c-3_i32_9 : i32 to vector<1x256xi32>
    %12 = arith.addi %5, %11 : vector<1x256xi32>
    %c16_i32 = arith.constant 16 : i32
    %13 = vector.broadcast %c16_i32 : i32 to vector<1x256xi32>
    %14 = arith.cmpi slt, %12, %13 : vector<1x256xi32>
    %15 = arith.andi %10, %14 : vector<1x256xi1>
    %16 = arith.extui %15 : vector<1x256xi1> to vector<1x256xi32>
    %17 = arith.sitofp %16 : vector<1x256xi32> to vector<1x256xf32>
    %18 = vector.broadcast %17 : vector<1x256xf32> to vector<8x256xf32>
    %19 = arith.mulf %6, %18 : vector<8x256xf32>
    %c0_10 = arith.constant 0 : index
    %c0_11 = arith.constant 0 : index
    %20 = vector.load %arg9[%c0_10, %c0_11] : memref<56x256xf32, #tpu.memory_space<vmem>>, vector<8x256xf32>
    tpu.vector_store %arg9[%c0_10, %c0_11], %19 {strides = array<i32>} : memref<56x256xf32, #tpu.memory_space<vmem>>, vector<8x256xf32>,
    %c0_12 = arith.constant 0 : index
    %c1 = arith.constant 1 : index
    %21 = vector.load %arg8[%c0_12, %c1] : memref<8x262xf32, #tpu.memory_space<vmem>>, vector<8x256xf32>
    %c-2_i32 = arith.constant -2 : i32
    %22 = vector.broadcast %c-2_i32 : i32 to vector<1x256xi32>
    %23 = arith.addi %5, %22 : vector<1x256xi32>
    %c0_i32_13 = arith.constant 0 : i32
    %24 = vector.broadcast %c0_i32_13 : i32 to vector<1x256xi32>
    %25 = arith.cmpi sge, %23, %24 : vector<1x256xi32>
    %c-2_i32_14 = arith.constant -2 : i32
    %26 = vector.broadcast %c-2_i32_14 : i32 to vector<1x256xi32>
    %27 = arith.addi %5, %26 : vector<1x256xi32>
    %c16_i32_15 = arith.constant 16 : i32
    %28 = vector.broadcast %c16_i32_15 : i32 to vector<1x256xi32>
    %29 = arith.cmpi slt, %27, %28 : vector<1x256xi32>
    %30 = arith.andi %25, %29 : vector<1x256xi1>
    %31 = arith.extui %30 : vector<1x256xi1> to vector<1x256xi32>
    %32 = arith.sitofp %31 : vector<1x256xi32> to vector<1x256xf32>
    %33 = vector.broadcast %32 : vector<1x256xf32> to vector<8x256xf32>
    %34 = arith.mulf %21, %33 : vector<8x256xf32>
    %c8 = arith.constant 8 : index
    %c0_16 = arith.constant 0 : index
    %35 = vector.load %arg9[%c8, %c0_16] : memref<56x256xf32, #tpu.memory_space<vmem>>, vector<8x256xf32>
    tpu.vector_store %arg9[%c8, %c0_16], %34 {strides = array<i32>} : memref<56x256xf32, #tpu.memory_space<vmem>>, vector<8x256xf32>,
    %c0_17 = arith.constant 0 : index
    %c2 = arith.constant 2 : index
    %36 = vector.load %arg8[%c0_17, %c2] : memref<8x262xf32, #tpu.memory_space<vmem>>, vector<8x256xf32>
    %c-1_i32 = arith.constant -1 : i32
    %37 = vector.broadcast %c-1_i32 : i32 to vector<1x256xi32>
    %38 = arith.addi %5, %37 : vector<1x256xi32>
    %c0_i32_18 = arith.constant 0 : i32
    %39 = vector.broadcast %c0_i32_18 : i32 to vector<1x256xi32>
    %40 = arith.cmpi sge, %38, %39 : vector<1x256xi32>
    %c-1_i32_19 = arith.constant -1 : i32
    %41 = vector.broadcast %c-1_i32_19 : i32 to vector<1x256xi32>
    %42 = arith.addi %5, %41 : vector<1x256xi32>
    %c16_i32_20 = arith.constant 16 : i32
    %43 = vector.broadcast %c16_i32_20 : i32 to vector<1x256xi32>
    %44 = arith.cmpi slt, %42, %43 : vector<1x256xi32>
    %45 = arith.andi %40, %44 : vector<1x256xi1>
    %46 = arith.extui %45 : vector<1x256xi1> to vector<1x256xi32>
    %47 = arith.sitofp %46 : vector<1x256xi32> to vector<1x256xf32>
    %48 = vector.broadcast %47 : vector<1x256xf32> to vector<8x256xf32>
    %49 = arith.mulf %36, %48 : vector<8x256xf32>
    %c16 = arith.constant 16 : index
    %c0_21 = arith.constant 0 : index
    %50 = vector.load %arg9[%c16, %c0_21] : memref<56x256xf32, #tpu.memory_space<vmem>>, vector<8x256xf32>
    tpu.vector_store %arg9[%c16, %c0_21], %49 {strides = array<i32>} : memref<56x256xf32, #tpu.memory_space<vmem>>, vector<8x256xf32>,
    %c0_22 = arith.constant 0 : index
    %c3_23 = arith.constant 3 : index
    %51 = vector.load %arg8[%c0_22, %c3_23] : memref<8x262xf32, #tpu.memory_space<vmem>>, vector<8x256xf32>
    %c24 = arith.constant 24 : index
    %c0_24 = arith.constant 0 : index
    %52 = vector.load %arg9[%c24, %c0_24] : memref<56x256xf32, #tpu.memory_space<vmem>>, vector<8x256xf32>
    tpu.vector_store %arg9[%c24, %c0_24], %51 {strides = array<i32>} : memref<56x256xf32, #tpu.memory_space<vmem>>, vector<8x256xf32>,
    %c0_25 = arith.constant 0 : index
    %c4 = arith.constant 4 : index
    %53 = vector.load %arg8[%c0_25, %c4] : memref<8x262xf32, #tpu.memory_space<vmem>>, vector<8x256xf32>
    %c1_i32 = arith.constant 1 : i32
    %54 = vector.broadcast %c1_i32 : i32 to vector<1x256xi32>
    %55 = arith.addi %5, %54 : vector<1x256xi32>
    %c0_i32_26 = arith.constant 0 : i32
    %56 = vector.broadcast %c0_i32_26 : i32 to vector<1x256xi32>
    %57 = arith.cmpi sge, %55, %56 : vector<1x256xi32>
    %c1_i32_27 = arith.constant 1 : i32
    %58 = vector.broadcast %c1_i32_27 : i32 to vector<1x256xi32>
    %59 = arith.addi %5, %58 : vector<1x256xi32>
    %c16_i32_28 = arith.constant 16 : i32
    %60 = vector.broadcast %c16_i32_28 : i32 to vector<1x256xi32>
    %61 = arith.cmpi slt, %59, %60 : vector<1x256xi32>
    %62 = arith.andi %57, %61 : vector<1x256xi1>
    %63 = arith.extui %62 : vector<1x256xi1> to vector<1x256xi32>
    %64 = arith.sitofp %63 : vector<1x256xi32> to vector<1x256xf32>
    %65 = vector.broadcast %64 : vector<1x256xf32> to vector<8x256xf32>
    %66 = arith.mulf %53, %65 : vector<8x256xf32>
    %c32 = arith.constant 32 : index
    %c0_29 = arith.constant 0 : index
    %67 = vector.load %arg9[%c32, %c0_29] : memref<56x256xf32, #tpu.memory_space<vmem>>, vector<8x256xf32>
    tpu.vector_store %arg9[%c32, %c0_29], %66 {strides = array<i32>} : memref<56x256xf32, #tpu.memory_space<vmem>>, vector<8x256xf32>,
    %c0_30 = arith.constant 0 : index
    %c5 = arith.constant 5 : index
    %68 = vector.load %arg8[%c0_30, %c5] : memref<8x262xf32, #tpu.memory_space<vmem>>, vector<8x256xf32>
    %c2_i32 = arith.constant 2 : i32
    %69 = vector.broadcast %c2_i32 : i32 to vector<1x256xi32>
    %70 = arith.addi %5, %69 : vector<1x256xi32>
    %c0_i32_31 = arith.constant 0 : i32
    %71 = vector.broadcast %c0_i32_31 : i32 to vector<1x256xi32>
    %72 = arith.cmpi sge, %70, %71 : vector<1x256xi32>
    %c2_i32_32 = arith.constant 2 : i32
    %73 = vector.broadcast %c2_i32_32 : i32 to vector<1x256xi32>
    %74 = arith.addi %5, %73 : vector<1x256xi32>
    %c16_i32_33 = arith.constant 16 : i32
    %75 = vector.broadcast %c16_i32_33 : i32 to vector<1x256xi32>
    %76 = arith.cmpi slt, %74, %75 : vector<1x256xi32>
    %77 = arith.andi %72, %76 : vector<1x256xi1>
    %78 = arith.extui %77 : vector<1x256xi1> to vector<1x256xi32>
    %79 = arith.sitofp %78 : vector<1x256xi32> to vector<1x256xf32>
    %80 = vector.broadcast %79 : vector<1x256xf32> to vector<8x256xf32>
    %81 = arith.mulf %68, %80 : vector<8x256xf32>
    %c40 = arith.constant 40 : index
    %c0_34 = arith.constant 0 : index
    %82 = vector.load %arg9[%c40, %c0_34] : memref<56x256xf32, #tpu.memory_space<vmem>>, vector<8x256xf32>
    tpu.vector_store %arg9[%c40, %c0_34], %81 {strides = array<i32>} : memref<56x256xf32, #tpu.memory_space<vmem>>, vector<8x256xf32>,
    %c0_35 = arith.constant 0 : index
    %c6 = arith.constant 6 : index
    %83 = vector.load %arg8[%c0_35, %c6] : memref<8x262xf32, #tpu.memory_space<vmem>>, vector<8x256xf32>
    %c3_i32 = arith.constant 3 : i32
    %84 = vector.broadcast %c3_i32 : i32 to vector<1x256xi32>
    %85 = arith.addi %5, %84 : vector<1x256xi32>
    %c0_i32_36 = arith.constant 0 : i32
    %86 = vector.broadcast %c0_i32_36 : i32 to vector<1x256xi32>
    %87 = arith.cmpi sge, %85, %86 : vector<1x256xi32>
    %c3_i32_37 = arith.constant 3 : i32
    %88 = vector.broadcast %c3_i32_37 : i32 to vector<1x256xi32>
    %89 = arith.addi %5, %88 : vector<1x256xi32>
    %c16_i32_38 = arith.constant 16 : i32
    %90 = vector.broadcast %c16_i32_38 : i32 to vector<1x256xi32>
    %91 = arith.cmpi slt, %89, %90 : vector<1x256xi32>
    %92 = arith.andi %87, %91 : vector<1x256xi1>
    %93 = arith.extui %92 : vector<1x256xi1> to vector<1x256xi32>
    %94 = arith.sitofp %93 : vector<1x256xi32> to vector<1x256xf32>
    %95 = vector.broadcast %94 : vector<1x256xf32> to vector<8x256xf32>
    %96 = arith.mulf %83, %95 : vector<8x256xf32>
    %c48 = arith.constant 48 : index
    %c0_39 = arith.constant 0 : index
    %97 = vector.load %arg9[%c48, %c0_39] : memref<56x256xf32, #tpu.memory_space<vmem>>, vector<8x256xf32>
    tpu.vector_store %arg9[%c48, %c0_39], %96 {strides = array<i32>} : memref<56x256xf32, #tpu.memory_space<vmem>>, vector<8x256xf32>,
    %c0_40 = arith.constant 0 : index
    %c0_41 = arith.constant 0 : index
    %98 = vector.load %arg3[%c0_40, %c0_41] : memref<24x56xf32, #tpu.memory_space<vmem>>, vector<24x56xf32>
    %c0_42 = arith.constant 0 : index
    %c0_43 = arith.constant 0 : index
    %99 = vector.load %arg9[%c0_42, %c0_43] : memref<56x256xf32, #tpu.memory_space<vmem>>, vector<56x256xf32>
    %cst_44 = arith.constant dense<0.000000e+00> : vector<24x256xf32>
    %100 = tpu.matmul %98, %99, %cst_44 {dimension_numbers = #tpu.dot_dimension_numbers<[1], [0], [0], [1], [0, 0, 1, 1], [], []>} : vector<24x56xf32>, vector<56x256xf32>, vector<24x256xf32> -> vector<24x256xf32>
    %c0_45 = arith.constant 0 : index
    %c0_46 = arith.constant 0 : index
    %101 = vector.load %arg4[%c0_45, %c0_46] : memref<24x1xf32, #tpu.memory_space<vmem>>, vector<24x1xf32>
    %102 = vector.broadcast %101 : vector<24x1xf32> to vector<24x256xf32>
    %103 = arith.addf %100, %102 : vector<24x256xf32>
    %cst_47 = arith.constant 0.000000e+00 : f32
    %104 = vector.broadcast %cst_47 : f32 to vector<24x256xf32>
    %105 = arith.maximumf %103, %104 : vector<24x256xf32>
    %cst_48 = arith.constant 0.000000e+00 : f32
    %106 = vector.broadcast %cst_48 : f32 to vector<24x352xf32>
    %c0_49 = arith.constant 0 : index
    %c0_50 = arith.constant 0 : index
    %107 = vector.load %arg10[%c0_49, %c0_50] : memref<24x352xf32, #tpu.memory_space<vmem>>, vector<24x352xf32>
    tpu.vector_store %arg10[%c0_49, %c0_50], %106 {strides = array<i32>} : memref<24x352xf32, #tpu.memory_space<vmem>>, vector<24x352xf32>,
    %c0_51 = arith.constant 0 : index
    %c48_52 = arith.constant 48 : index
    %108 = vector.load %arg10[%c0_51, %c48_52] : memref<24x352xf32, #tpu.memory_space<vmem>>, vector<24x256xf32>
    tpu.vector_store %arg10[%c0_51, %c48_52], %105 {strides = array<i32>} : memref<24x352xf32, #tpu.memory_space<vmem>>, vector<24x256xf32>,
    %c0_53 = arith.constant 0 : index
    %c32_54 = arith.constant 32 : index
    %109 = vector.load %arg10[%c0_53, %c32_54] : memref<24x352xf32, #tpu.memory_space<vmem>>, vector<8x256xf32>
    %c0_55 = arith.constant 0 : index
    %c0_56 = arith.constant 0 : index
    %110 = vector.load %arg11[%c0_55, %c0_56] : memref<72x256xf32, #tpu.memory_space<vmem>>, vector<8x256xf32>
    tpu.vector_store %arg11[%c0_55, %c0_56], %109 {strides = array<i32>} : memref<72x256xf32, #tpu.memory_space<vmem>>, vector<8x256xf32>,
    %c0_57 = arith.constant 0 : index
    %c48_58 = arith.constant 48 : index
    %111 = vector.load %arg10[%c0_57, %c48_58] : memref<24x352xf32, #tpu.memory_space<vmem>>, vector<8x256xf32>
    %c8_59 = arith.constant 8 : index
    %c0_60 = arith.constant 0 : index
    %112 = vector.load %arg11[%c8_59, %c0_60] : memref<72x256xf32, #tpu.memory_space<vmem>>, vector<8x256xf32>
    tpu.vector_store %arg11[%c8_59, %c0_60], %111 {strides = array<i32>} : memref<72x256xf32, #tpu.memory_space<vmem>>, vector<8x256xf32>,
    %c0_61 = arith.constant 0 : index
    %c64 = arith.constant 64 : index
    %113 = vector.load %arg10[%c0_61, %c64] : memref<24x352xf32, #tpu.memory_space<vmem>>, vector<8x256xf32>
    %c16_62 = arith.constant 16 : index
    %c0_63 = arith.constant 0 : index
    %114 = vector.load %arg11[%c16_62, %c0_63] : memref<72x256xf32, #tpu.memory_space<vmem>>, vector<8x256xf32>
    tpu.vector_store %arg11[%c16_62, %c0_63], %113 {strides = array<i32>} : memref<72x256xf32, #tpu.memory_space<vmem>>, vector<8x256xf32>,
    %c8_64 = arith.constant 8 : index
    %c16_65 = arith.constant 16 : index
    %115 = vector.load %arg10[%c8_64, %c16_65] : memref<24x352xf32, #tpu.memory_space<vmem>>, vector<8x256xf32>
    %c24_66 = arith.constant 24 : index
    %c0_67 = arith.constant 0 : index
    %116 = vector.load %arg11[%c24_66, %c0_67] : memref<72x256xf32, #tpu.memory_space<vmem>>, vector<8x256xf32>
    tpu.vector_store %arg11[%c24_66, %c0_67], %115 {strides = array<i32>} : memref<72x256xf32, #tpu.memory_space<vmem>>, vector<8x256xf32>,
    %c8_68 = arith.constant 8 : index
    %c48_69 = arith.constant 48 : index
    %117 = vector.load %arg10[%c8_68, %c48_69] : memref<24x352xf32, #tpu.memory_space<vmem>>, vector<8x256xf32>
    %c32_70 = arith.constant 32 : index
    %c0_71 = arith.constant 0 : index
    %118 = vector.load %arg11[%c32_70, %c0_71] : memref<72x256xf32, #tpu.memory_space<vmem>>, vector<8x256xf32>
    tpu.vector_store %arg11[%c32_70, %c0_71], %117 {strides = array<i32>} : memref<72x256xf32, #tpu.memory_space<vmem>>, vector<8x256xf32>,
    %c8_72 = arith.constant 8 : index
    %c80 = arith.constant 80 : index
    %119 = vector.load %arg10[%c8_72, %c80] : memref<24x352xf32, #tpu.memory_space<vmem>>, vector<8x256xf32>
    %c40_73 = arith.constant 40 : index
    %c0_74 = arith.constant 0 : index
    %120 = vector.load %arg11[%c40_73, %c0_74] : memref<72x256xf32, #tpu.memory_space<vmem>>, vector<8x256xf32>
    tpu.vector_store %arg11[%c40_73, %c0_74], %119 {strides = array<i32>} : memref<72x256xf32, #tpu.memory_space<vmem>>, vector<8x256xf32>,
    %c16_75 = arith.constant 16 : index
    %c0_76 = arith.constant 0 : index
    %121 = vector.load %arg10[%c16_75, %c0_76] : memref<24x352xf32, #tpu.memory_space<vmem>>, vector<8x256xf32>
    %c48_77 = arith.constant 48 : index
    %c0_78 = arith.constant 0 : index
    %122 = vector.load %arg11[%c48_77, %c0_78] : memref<72x256xf32, #tpu.memory_space<vmem>>, vector<8x256xf32>
    tpu.vector_store %arg11[%c48_77, %c0_78], %121 {strides = array<i32>} : memref<72x256xf32, #tpu.memory_space<vmem>>, vector<8x256xf32>,
    %c16_79 = arith.constant 16 : index
    %c48_80 = arith.constant 48 : index
    %123 = vector.load %arg10[%c16_79, %c48_80] : memref<24x352xf32, #tpu.memory_space<vmem>>, vector<8x256xf32>
    %c56 = arith.constant 56 : index
    %c0_81 = arith.constant 0 : index
    %124 = vector.load %arg11[%c56, %c0_81] : memref<72x256xf32, #tpu.memory_space<vmem>>, vector<8x256xf32>
    tpu.vector_store %arg11[%c56, %c0_81], %123 {strides = array<i32>} : memref<72x256xf32, #tpu.memory_space<vmem>>, vector<8x256xf32>,
    %c16_82 = arith.constant 16 : index
    %c96 = arith.constant 96 : index
    %125 = vector.load %arg10[%c16_82, %c96] : memref<24x352xf32, #tpu.memory_space<vmem>>, vector<8x256xf32>
    %c64_83 = arith.constant 64 : index
    %c0_84 = arith.constant 0 : index
    %126 = vector.load %arg11[%c64_83, %c0_84] : memref<72x256xf32, #tpu.memory_space<vmem>>, vector<8x256xf32>
    tpu.vector_store %arg11[%c64_83, %c0_84], %125 {strides = array<i32>} : memref<72x256xf32, #tpu.memory_space<vmem>>, vector<8x256xf32>,
    %c0_85 = arith.constant 0 : index
    %c0_86 = arith.constant 0 : index
    %127 = vector.load %arg5[%c0_85, %c0_86] : memref<24x72xf32, #tpu.memory_space<vmem>>, vector<24x72xf32>
    %c0_87 = arith.constant 0 : index
    %c0_88 = arith.constant 0 : index
    %128 = vector.load %arg11[%c0_87, %c0_88] : memref<72x256xf32, #tpu.memory_space<vmem>>, vector<72x256xf32>
    %cst_89 = arith.constant dense<0.000000e+00> : vector<24x256xf32>
    %129 = tpu.matmul %127, %128, %cst_89 {dimension_numbers = #tpu.dot_dimension_numbers<[1], [0], [0], [1], [0, 0, 1, 1], [], []>} : vector<24x72xf32>, vector<72x256xf32>, vector<24x256xf32> -> vector<24x256xf32>
    %c0_90 = arith.constant 0 : index
    %c0_91 = arith.constant 0 : index
    %130 = vector.load %arg6[%c0_90, %c0_91] : memref<24x1xf32, #tpu.memory_space<vmem>>, vector<24x1xf32>
    %131 = vector.broadcast %130 : vector<24x1xf32> to vector<24x256xf32>
    %132 = arith.addf %129, %131 : vector<24x256xf32>
    %cst_92 = arith.constant 0.000000e+00 : f32
    %133 = vector.broadcast %cst_92 : f32 to vector<24x256xf32>
    %134 = arith.maximumf %132, %133 : vector<24x256xf32>
    %135 = vector.extract_strided_slice %134 {offsets = [0, 0], sizes = [8, 256], strides = [1, 1]} : vector<24x256xf32> to vector<8x256xf32>
    %136 = vector.extract_strided_slice %134 {offsets = [8, 0], sizes = [8, 256], strides = [1, 1]} : vector<24x256xf32> to vector<8x256xf32>
    %137 = arith.addf %135, %136 : vector<8x256xf32>
    %138 = vector.extract_strided_slice %134 {offsets = [16, 0], sizes = [8, 256], strides = [1, 1]} : vector<24x256xf32> to vector<8x256xf32>
    %139 = arith.addf %137, %138 : vector<8x256xf32>
    %c0_93 = arith.constant 0 : index
    %c0_94 = arith.constant 0 : index
    %c0_95 = arith.constant 0 : index
    %140 = vector.load %arg7[%c0_93, %c0_94, %c0_95] : memref<1x8x256xf32, #tpu.memory_space<vmem>>, vector<1x8x256xf32>
    %141 = vector.shape_cast %140 : vector<1x8x256xf32> to vector<8x256xf32>
    %142 = vector.shape_cast %139 : vector<8x256xf32> to vector<1x8x256xf32>
    tpu.vector_store %arg7[%c0_93, %c0_94, %c0_95], %142 {strides = array<i32>} : memref<1x8x256xf32, #tpu.memory_space<vmem>>, vector<1x8x256xf32>,
    return
  }
  func.func @transform_0(%arg0: i32) -> (i32, i32, i32) {
    %c0_i32 = arith.constant 0 : i32
    %c0_i32_0 = arith.constant 0 : i32
    %c0_i32_1 = arith.constant 0 : i32
    return %arg0, %c0_i32, %c0_i32_0 : i32, i32, i32
  }
  func.func @transform_1(%arg0: i32) -> (i32, i32) {
    %c0_i32 = arith.constant 0 : i32
    %c0_i32_0 = arith.constant 0 : i32
    %c0_i32_1 = arith.constant 0 : i32
    return %c0_i32, %c0_i32_0 : i32, i32
  }
  func.func @transform_2(%arg0: i32) -> (i32, i32) {
    %c0_i32 = arith.constant 0 : i32
    %c0_i32_0 = arith.constant 0 : i32
    %c0_i32_1 = arith.constant 0 : i32
    return %c0_i32, %c0_i32_0 : i32, i32
  }
  func.func @transform_3(%arg0: i32) -> (i32, i32) {
    %c0_i32 = arith.constant 0 : i32
    %c0_i32_0 = arith.constant 0 : i32
    %c0_i32_1 = arith.constant 0 : i32
    return %c0_i32, %c0_i32_0 : i32, i32
  }
  func.func @transform_4(%arg0: i32) -> (i32, i32) {
    %c0_i32 = arith.constant 0 : i32
    %c0_i32_0 = arith.constant 0 : i32
    %c0_i32_1 = arith.constant 0 : i32
    return %c0_i32, %c0_i32_0 : i32, i32
  }
  func.func @transform_5(%arg0: i32) -> (i32, i32) {
    %c0_i32 = arith.constant 0 : i32
    %c0_i32_0 = arith.constant 0 : i32
    %c0_i32_1 = arith.constant 0 : i32
    return %c0_i32, %c0_i32_0 : i32, i32
  }
  func.func @transform_6(%arg0: i32) -> (i32, i32, i32) {
    %c0_i32 = arith.constant 0 : i32
    %c0_i32_0 = arith.constant 0 : i32
    %c0_i32_1 = arith.constant 0 : i32
    return %arg0, %c0_i32, %c0_i32_0 : i32, i32, i32
  }
}

</mosaic_0001>

<bundles_post_ra>
// kernel: tpu_custom_call.1
= control target key start
LH: loop header
LB: loop body
LE: loop exit
PB: predicated region body
PF: predicated region fallthrough
CT: control target
= control target key end

     0   :  { %11 = vsyncpa [#allocation7], 0  ;;  %s1722_s0 = inlined_call_operand.hbm [shape: f32[2,4,256], index: 0, kind: input, shape index: {}]   ;;  %s1723_s1 = inlined_call_operand.hbm [shape: s32[1,256], index: 1, kind: input, shape index: {}]   ;;  %s1724_s2 = inlined_call_operand.vmem [shape: f32[24,56], index: 2, kind: input, shape index: {}]   ;;  %s1725_s3 = inlined_call_operand.vmem [shape: f32[24,1], index: 3, kind: input, shape index: {}]   ;;  %s1726_s4 = inlined_call_operand.vmem [shape: f32[24,72], index: 4, kind: input, shape index: {}]   ;;  %s1727_s5 = inlined_call_operand.vmem [shape: f32[24,1], index: 5, kind: input, shape index: {}]   ;;  %s1728_s6 = inlined_call_operand.hbm [shape: f32[2,8,256], index: 6, kind: output, shape index: {}]  }
   0x1   :  { %13 = vsyncpa [#allocation7 + $0x1], 0 }
   0x2   :  { %14 = vsyncpa [#allocation10], 0 }
   0x3   :  { %15 = vsyncpa [#allocation8], 0 }
   0x4   :  { %17 = vsyncpa [#allocation8 + $0x1], 0  ;;  %s1464_s21 = smov 0   ;;  %s1466_s22 = smov 0  }
   0x5   :  { %s1468_s23 = smov 0   ;;  %s1470_s24 = smov 0  }
   0x6 LB: > { %s1485_s25 = sadd.s32 4294967295, %s1406_s24   ;;  %s1060_s26 = sadd.s32 4294967294, %s1406_s24   ;;  %s1406_s24 = sphi %s1470_s24, %s1738_s24   ;;  %s1402_s23 = sphi %s1468_s23, %s1737_s23   ;;  %s1398_s22 = sphi %s1466_s22, %s1736_s22   ;;  %s1394_s21 = sphi %s1464_s21, %s1735_s21  }
   0x7   : > { %p43_p0 = scmp.ne.s32.totalorder %s1398_s22, %s1394_s21  ;;  %p44_p1 = scmp.eq.s32.totalorder %s1485_s25, 0 }
   0x8   : > { %p172_p2 = scmp.eq.s32.totalorder %s1485_s25, 1  ;;  %p178_p3 = scmp.eq.s32.totalorder %s1060_s26, 1 }
   0x9   : > { %p1494_p4 = por %p44_p1, %p43_p0  ;;  %p1061_p5 = scmp.ge.s32.totalorder %s1406_s24, 1 }
   0xa   : > { %p1499_p6 = por %p178_p3, %p43_p0  ;;  %p185_p7 = scmp.lt.s32.totalorder %s1406_s24, 3 }
   0xb   : > { %s197_s7 = sshll.u32 %s1723_s1, 4  ;;  %s1408_s9 = smov [#allocation9]   ;;  %s198_s7 = int_to_ptr.hbm [resolvable:$true] %s197_s7 }
   0xc   : > { %p1507_p8 = pnand %p1061_p5, %p185_p7  ;;  %s199_s10 = sshll.u32 %s1408_s9, 4  ;;  %s200_s10 = int_to_ptr.vmem [resolvable:$true] %s199_s10 }
   0xd   : > { %s1517_s11 = sadd.s32 1, %s1406_s24   ;;  %s30_s12 = sadd.s32 1, %s1402_s23 }
   0xe   : > { %p1104_p10 = pneg %p1507_p8  ;;  %s27_s13 = ssub.s32 %s1406_s24, %s1517_s11 }
   0xf   : > { %p28_p12 = scmp.eq.s32.totalorder %s27_s13, 0  ;;  %p37_p13 = scmp.ne.s32.totalorder %s1402_s23, %s1398_s22 }
  0x10   : > { %p1105_p11 = pnand %p1104_p10, %p44_p1  ;;  %p38_p0 = scmp.eq.s32.totalorder %s1406_s24, 0 }
  0x11   : > { %s1526_s14 = scalar_select %p28_p12, %s1402_s23, %s30_s12  }
  0x12   : > { %1107 = dma.hbm_to_vmem [thread:$0]  (!%p1105_p11), %s198_s7, 32, %s200_s10, [#allocation10]  }
  0x13   : > { %p1530_p3 = por %p172_p2, %p37_p13  ;;  %p1117_p5 = scmp.lt.s32.totalorder %s1406_s24, 2 }
  0x14   : > { %s222_s16 = sand.u32 1, %s1402_s23   ;;  %s1094_s17 = sshll.u32 %s1406_s24, 3 }
  0x15   : > { %p39_p7 = por %p38_p0, %p37_p13  ;;  %s1064_s18 = sshll.u32 %s222_s16, 3 }
  0x16   : > { %s231_s26 = scalar_lea.hbm %s1722_s0, %s1094_s17  ;;  %s226_s30 = scalar_lea.vmem [#allocation6], %s1064_s18 }
  0x17   : > { %s233_s29 = sshll.u32 %s231_s26, 4  ;;  %s235_s7 = sshll.u32 %s226_s30, 4  ;;  %s234_s29 = int_to_ptr.hbm [resolvable:$true] %s233_s29  ;;  %s236_s7 = int_to_ptr.vmem [resolvable:$true] %s235_s7 }
  0x18   : > { %p1540_p10 = pnand %p1117_p5, %p39_p7  ;;  %s223_s10 = scalar_lea.sflag [#allocation7], %s222_s16 }
  0x19   : > { %s1306_s12 = sshra.s32 %s234_s29, 4  ;;  %s1313_s18 = scalar_lea.hbm %s1722_s0, 16  ;;  %s1307_s12 = int_to_ptr.hbm [resolvable:$true] %s1306_s12 }
  0x1a   : > { %s1308_s13 = scalar_lea.hbm %s1307_s12, 8  ;;  %p1310_p11 = pneg %p1540_p10 }
  0x1b   : > { %p1309_p2 = scmp.ne.s32.totalorder %s1307_s12, %s1308_s13  ;;  %p1314_p0 = scmp.lt.s32.totalorder %s1307_s12, %s1722_s0 }
  0x1c   : > { %p1315_p5 = scmp.lt.s32.totalorder %s1313_s18, %s1308_s13 }
  0x1d   : > { %p1311_p12 = pnand %p1310_p11, %p1309_p2 }
  0x1e   : > { %p1316_p7 = por %p1315_p5, %p1314_p0 }
  0x1f   : > { %p1312_p13 = pneg %p1311_p12 }
  0x21   : > { %p1317_p9 = pnand %p1316_p7, %p1312_p13 }
  0x23   : > { %1320 = shalt.err (!%p1317_p9)
}
  0x24   : > { %1111 = dma.hbm_to_vmem [thread:$0]  (!%p1540_p10), %s234_s29, 128, %s236_s7, %s223_s10  }
  0x25   : > { %244 = sbr.rel (%p1507_p8) target bundleno = 928 (0x3a0), region = 44  ;;  %s1557_s16 = sand.u32 (!%p1507_p8), 1, %s1398_s22  }
  0x26   : > { %s1068_s30 = sshll.u32 (!%p1507_p8), %s1557_s16, 3  ;;  %s247_s17 = scalar_lea.sflag (!%p1507_p8), [#allocation7], %s1557_s16 }
  0x27   : > { %s250_s19 = scalar_lea.vmem (!%p1507_p8), [#allocation6], %s1068_s30 }
  0x2a   : > { %1381 = dma.done.wait (%p1494_p4), %s247_s17, 128  }
  0x2b   : > { %1383 = vsyncadd (%p1494_p4), %s247_s17, 4294967168 }
  0x2c   : > { %1385 = dma.done.wait (%p44_p1), [#allocation10], 32  }
  0x2d   : > { %1387 = vsyncadd (%p44_p1), [#allocation10], 4294967264  ;;  %v1409_v0 = vmov 0.0   ;;  %v289_v1 = vld [vmem:[%s250_s19] sm:$0xff]  ;;  %v1574_v2 = vld [vmem:[#allocation9] sm:$0x3] }
  0x2e   : > { %285 = vst [vmem:[#allocation2] sm:$0xff] %v1409_v0  ;;  %v508_v3 = vadd.s32 3, %v1574_v2  ;;  %v468_v4 = vadd.s32 2, %v1574_v2  ;;  %v428_v5 = vadd.s32 1, %v1574_v2  ;;  %v369_v6 = vadd.s32 4294967295, %v1574_v2  ;;  %s1410_s27 = smov 3  }
  0x2f   : > { %286 = vst [vmem:[#allocation2 + $0x8] sm:$0xff] %v1409_v0  ;;  %v329_v7 = vadd.s32 4294967294, %v1574_v2  ;;  %s1411_s8 = smov 6   ;;  %s1412_s29 = smov 4   ;;  %vm287_vm15 = vcmask 48128  }
  0x30   : > { %647 = vst [vmem:[#allocation4] sm:$0xff] %v1409_v0  ;;  %vm509_vm0 = vcmp.ge.s32.totalorder %v508_v3, 0  ;;  %vm510_vm1 = vcmp.lt.s32.totalorder %v508_v3, 16  ;;  %vm469_vm2 = vcmp.ge.s32.totalorder %v468_v4, 0  ;;  %vm470_vm3 = vcmp.lt.s32.totalorder %v468_v4, 16  ;;  %s1413_s7 = smov 5  }
  0x31   : > { %651 = vst [vmem:[#allocation4 + $0x18] sm:$0xff] %v1409_v0  ;;  %vm511_vm4 = vmand %vm509_vm0, %vm510_vm1  ;;  %vm429_vm5 = vcmp.ge.s32.totalorder %v428_v5, 0  ;;  %vm430_vm6 = vcmp.lt.s32.totalorder %v428_v5, 16  ;;  %vm370_vm8 = vcmp.ge.s32.totalorder %v369_v6, 0  ;;  %vm371_vm9 = vcmp.lt.s32.totalorder %v369_v6, 16  ;;  %s1414_s9 = smov 2  }
  0x32   : > { %654 = vst [vmem:[#allocation4 + $0x30] sm:$0xff] %v1409_v0  ;;  %v1076_v8 = vsel %vm511_vm4, 1.0, %v1409_v0  ;;  %vm471_vm7 = vmand %vm469_vm2, %vm470_vm3  ;;  %vm330_vm11 = vcmp.ge.s32.totalorder %v329_v7, 0  ;;  %vm331_vm12 = vcmp.lt.s32.totalorder %v329_v7, 16  ;;  %s1415_s10 = smov 1   ;;  %vm303_vm0 = vcmask 1043480  }
  0x33   : > { %291 = vst [vmem:[#allocation1] ss:$2 sm:$0xff] %v289_v1  ;;  %v515_v9 = vperm.slane %v1076_v8, 0  ;;  %v516_v10 = vperm.slane %v1076_v8, 1  ;;  %v1075_v11 = vsel %vm471_vm7, 1.0, %v1409_v0  ;;  %vm431_vm10 = vmand %vm429_vm5, %vm430_vm6  ;;  %vm298_vm1 = vcmask 23552  }
  0x34   : > { %vm372_vm13 = vmand %vm370_vm8, %vm371_vm9  ;;  %v1074_v14 = vsel %vm431_vm10, 1.0, %v1409_v0  ;;  %v475_v15 = vperm.slane %v1075_v11, 0  ;;  %v476_v16 = vperm.slane %v1075_v11, 1  ;;  %288 = vst.msk [vmem:[#allocation2 + $0x10] sm:$0xff] %vm287_vm15, %v1409_v0  ;;  %vm306_vm2 = vcmask 19456   ;;  %s1416_s12 = smov 125  }
  0x35   : > { %v1173_v13 = vpack.i.bf16 %v516_v10, %v515_v9  ;;  %v435_v17 = vperm.slane %v1074_v14, 0  ;;  %v436_v18 = vperm.slane %v1074_v14, 1  ;;  %vm332_vm14 = vmand %vm330_vm11, %vm331_vm12  ;;  %v1073_v19 = vsel %vm372_vm13, 1.0, %v1409_v0  ;;  %s1417_s13 = smov 124   ;;  %s1418_s18 = smov 122  }
  0x36   : > { %v1178_v22 = vpack.i.bf16 %v476_v16, %v475_v15  ;;  %v1072_v23 = vsel %vm332_vm14, 1.0, %v1409_v0  ;;  %v376_v24 = vperm.slane %v1073_v19, 0  ;;  %v377_v25 = vperm.slane %v1073_v19, 1  ;;  %s1419_s20 = smov 123   ;;  %s1420_s26 = smov 126  }
  0x37   : > { %1174 = vrot.lane.b32.xlu1 %v1173_v13, %s1411_s8  ;;  %v1183_v20 = vpack.i.bf16 %v436_v18, %v435_v17  ;;  %v336_v26 = vperm.slane %v1072_v23, 0  ;;  %v337_v27 = vperm.slane %v1072_v23, 1  ;;  %vm481_vm3 = vcmask 39936   ;;  %s1421_s30 = smov 127   ;;  %s1425_s17 = smov 80  }
  0x38   : > { %v1188_v28 = vpack.i.bf16 %v377_v25, %v376_v24  ;;  %vm441_vm4 = vcmask 31744   ;;  %vm382_vm5 = vcmask 15360   ;;  %vm342_vm6 = vcmask 7168   ;;  %s1426_s19 = smov 32   ;;  %s1095_s8 = sshll.u32 %s1485_s25, 4 }
  0x39   : > { %1184 = vrot.lane.b32.xlu2 %v1183_v20, %s1412_s29  ;;  %v1193_v29 = vpack.i.bf16 %v337_v27, %v336_v26  ;;  %v311_v24 = vadd.s32 4294967293, %v1574_v2  ;;  %vm537_vm7 = vcmask 998400   ;;  %vm498_vm10 = vcmask 1006592  }
  0x3a   : > { %v292_v12 = vld.sshfl [vmem:[#allocation1] sm:$0xff pattern:$0x75316420]  ;;  %v293_v21 = vld.sshfl [vmem:[#allocation1 + $0x8] sm:$0xff pattern:$0x75316420] }
  0x3b   : > { %294 = vrot.lane.b32.xlu0 %v292_v12, %s1410_s27  ;;  %vm312_vm8 = vcmp.ge.s32.totalorder %v311_v24, 0  ;;  %vm313_vm9 = vcmp.lt.s32.totalorder %v311_v24, 16  ;;  %vm458_vm12 = vcmask 1014784   ;;  %vm418_vm13 = vcmask 1022976  }
  0x3c   : > { %vm314_vm11 = vmand %vm312_vm8, %vm313_vm9  ;;  %vm399_vm14 = vcmask 1031168   ;;  %vm889_vm8 = vcmask 588800  }
  0x3f   : > { %1179 = vrot.lane.b32.xlu1 %v1178_v22, %s1413_s7  ;;  %v1422_v22 = vmov 0   ;;  %s1428_s7 = smov 64  }
  0x40   : > { %1230 = vset.pattern.permute.xlu0 %v1422_v22  ;;  %1228 = vset.pattern.permute.xlu1 %v1422_v22 }
  0x41   : > { %1189 = vrot.lane.b32.xlu2 %v1188_v28, %s1414_s9  ;;  %s975_s9 = scalar_lea.hbm %s1728_s6, %s1095_s8 }
  0x42   : > { %1229 = vset.pattern.permute.xlu2 %v1422_v22 }
  0x43   : > { %296 = vrot.lane.b32.xlu0 %v293_v21, %s1410_s27  ;;  %v561_v21 = vld [vmem:[%s1725_s3] sm:$0xff]  ;;  %s1427_s27 = smov 96  }
  0x4b   : > { %1194 = vrot.lane.b32.xlu0 %v1193_v29, %s1415_s10 }
  0x93   : > { %v1185_v34 = vpop.permute.xlu2 %1184 }
  0x94   : > { %v1187_v35 = vunpack.i.h.bf16 %v1185_v34  ;;  %v1186_v48 = vunpack.i.l.bf16 %v1185_v34 }
  0x96   : > { %v442_v52 = vsel %vm441_vm4, %v1186_v48, %v1187_v35  ;;  %vm843_vm4 = vcmask 261120  }
  0x9b   : > { %v1190_v46 = vpop.permute.xlu2 %1189 }
  0x9c   : > { %v1192_v49 = vunpack.i.h.bf16 %v1190_v46  ;;  %v1191_v53 = vunpack.i.l.bf16 %v1190_v46 }
  0x9e   : > { %v383_v57 = vsel %vm382_vm5, %v1191_v53, %v1192_v49  ;;  %vm728_vm5 = vcmask 654336  }
  0xa9   : > { %v1175_v31 = vpop.permute.xlu1 %1174 }
  0xaa   : > { %v1177_v45 = vunpack.i.h.bf16 %v1175_v31  ;;  %v1176_v54 = vunpack.i.l.bf16 %v1175_v31  ;;  %v563_v31 = vld [vmem:[%s1725_s3 + $0x10] sm:$0xff] }
  0xac   : > { %v521_v59 = vsel %vm287_vm15, %v1176_v54, %v1177_v45  ;;  %vm359_vm15 = vcmask 1039360  }
  0xad   : > { %v295_v30 = vpop.permute.xlu0 %294 }
  0xae   : > { %304 = vst.msk [vmem:[#allocation2] sm:$0xf] %vm303_vm0, %v295_v30  ;;  %vm579_vm0 = vcmask 457728  }
  0xb1   : > { %v1180_v36 = vpop.permute.xlu1 %1179 }
  0xb2   : > { %v1182_v37 = vunpack.i.h.bf16 %v1180_v36  ;;  %v1181_v38 = vunpack.i.l.bf16 %v1180_v36 }
  0xb4   : > { %v482_v43 = vsel %vm481_vm3, %v1181_v38, %v1182_v37  ;;  %vm688_vm3 = vcmask 1047936  }
  0xb5   : > { %v297_v32 = vpop.permute.xlu0 %296  ;;  %v1588_v40 = vld [vmem:[#allocation2] sm:$0xff] }
  0xb6   : > { %v299_v33 = vsel %vm298_vm1, %v295_v30, %v297_v32  ;;  %307 = vst.msk [vmem:[#allocation2 + $0x10] sm:$0xf] %vm306_vm2, %v297_v32  ;;  %v486_v50 = vmul.f32 %v1181_v38, %v1588_v40  ;;  %v446_v63 = vmul.f32 %v1186_v48, %v1588_v40  ;;  %v387_v4 = vmul.f32 %v1191_v53, %v1588_v40  ;;  %v562_v32 = vld [vmem:[%s1725_s3 + $0x8] sm:$0xff] }
  0xb7   : > { %305 = vst [vmem:[#allocation2 + $0x8] sm:$0xf] %v299_v33  ;;  %v525_v6 = vmul.f32 %v1176_v54, %v1588_v40  ;;  %vm649_vm1 = vcmask 785408   ;;  %vm675_vm2 = vcmask 392192  }
  0xb8   : > { %656 = vst.msk [vmem:[#allocation4 + $0x40] sm:$0xff] %vm649_vm1, %v1409_v0 }
  0xb9   : > { %650 = vst.msk [vmem:[#allocation4 + $0x10] sm:$0xff] %vm649_vm1, %v1409_v0 }
  0xba   : > { %653 = vst.msk [vmem:[#allocation4 + $0x28] sm:$0xff] %vm649_vm1, %v1409_v0 }
  0xbd   : > { %v467_v39 = vld [vmem:[#allocation2 + $0x10] sm:$0xff]  ;;  %v1195_v55 = vpop.permute.xlu0 %1194 }
  0xbe   : > { %416 = vrot.lane.b32.xlu2 %v467_v39, %s1416_s12  ;;  %v448_v41 = vmul.f32 %v1187_v35, %v467_v39  ;;  %v1590_v42 = vld [vmem:[#allocation2 + $0x8] sm:$0xff]  ;;  %v527_v51 = vmul.f32 %v1177_v45, %v467_v39  ;;  %v488_v58 = vmul.f32 %v1182_v37, %v467_v39  ;;  %v1197_v61 = vunpack.i.h.bf16 %v1195_v55 }
  0xbf   : > { %v1198_v44 = vpack.i.bf16 %v1590_v42, %v1588_v40  ;;  %v487_v47 = vmul.f32 %v482_v43, %v1590_v42  ;;  %v447_v60 = vmul.f32 %v442_v52, %v1590_v42  ;;  %v1196_v62 = vunpack.i.l.bf16 %v1195_v55 }
  0xc0   : > { %456 = vrot.lane.b32.xlu0 %v448_v41, %s1417_s13  ;;  %v388_v1 = vmul.f32 %v1590_v42, %v383_v57  ;;  %v526_v3 = vmul.f32 %v521_v59, %v1590_v42  ;;  %v349_v13 = vmul.f32 %v1197_v61, %v467_v39  ;;  %v389_v14 = vmul.f32 %v1192_v49, %v467_v39 }
  0xc1   : > { %1199 = vrot.lane.b32.xlu1 %v1198_v44, %s1416_s12  ;;  %v1208_v56 = vpack.i.bf16 %v487_v47, %v486_v50  ;;  %v1213_v5 = vpack.i.bf16 %v447_v60, %v446_v63  ;;  %v343_v7 = vsel %vm342_vm6, %v1196_v62, %v1197_v61  ;;  %v347_v10 = vmul.f32 %v1196_v62, %v1588_v40  ;;  %v544_v62 = vld [vmem:[%s1724_s2] sm:$0xff]  ;;  %v545_v63 = vld [vmem:[%s1724_s2 + $0x8] sm:$0xff]  ;;  %s979_s12 = sshll.u32 %s975_s9, 4  ;;  %s980_s12 = int_to_ptr.hbm [resolvable:$true] %s979_s12 }
  0xc2   : > { %v1218_v8 = vpack.i.bf16 %v388_v1, %v387_v4  ;;  %v1203_v9 = vpack.i.bf16 %v526_v3, %v525_v6  ;;  %v348_v11 = vmul.f32 %v1590_v42, %v343_v7  ;;  %v1071_v43 = vsel %vm314_vm11, 1.0, %v1409_v0 }
  0xc3   : > { %v318_v54 = vperm.slane %v1071_v43, 0  ;;  %v319_v55 = vperm.slane %v1071_v43, 1  ;;  %v871_v43 = vld [vmem:[%s1727_s5] sm:$0xff]  ;;  %vm766_vm6 = vcmask 916480  }
  0xc4   : > { %v1223_v12 = vpack.i.bf16 %v348_v11, %v347_v10 }
  0xc5   : > { %v322_v60 = vmul.f32 %v1588_v40, %v318_v54  ;;  %v323_v61 = vmul.f32 %v1590_v42, %v319_v55  ;;  %v546_v40 = vld [vmem:[%s1724_s2 + $0x10] sm:$0xff] }
  0xc6   : > { %535 = vrot.lane.b32.xlu2 %v527_v51, %s1418_s18 }
  0xc8   : > { %1209 = vrot.lane.b32.xlu0 %v1208_v56, %s1419_s20 }
  0xc9   : > { %496 = vrot.lane.b32.xlu1 %v488_v58, %s1419_s20 }
  0xce   : > { %1214 = vrot.lane.b32.xlu2 %v1213_v5, %s1417_s13  ;;  %s964_s13 = scalar_lea.sflag [#allocation8], %s1557_s16 }
  0xd0   : > { %1219 = vrot.lane.b32.xlu0 %v1218_v8, %s1420_s26 }
  0xd1   : > { %1204 = vrot.lane.b32.xlu1 %v1203_v9, %s1418_s18  ;;  %s1350_s18 = sshra.s32 %s980_s12, 4  ;;  %s1351_s18 = int_to_ptr.hbm [resolvable:$true] %s1350_s18 }
  0xd2   : > { %s1352_s20 = scalar_lea.hbm %s1351_s18, 16  ;;  %p1357_p9 = scmp.lt.s32.totalorder %s1351_s18, %s1728_s6 }
  0xd3   : > { %p1353_p1 = scmp.ne.s32.totalorder %s1351_s18, %s1352_s20 }
  0xd5   : > { %p1354_p4 = pnand %p1353_p1, %p1530_p3 }
  0xd6   : > { %1224 = vrot.lane.b32.xlu2 %v1223_v12, %s1421_s30 }
  0xd7   : > { %p1355_p8 = pneg %p1354_p4 }
  0xd8   : > { %357 = vrot.lane.b32.xlu0 %v349_v13, %s1421_s30  ;;  %s1424_s30 = smov 112  }
  0xd9   : > { %397 = vrot.lane.b32.xlu1 %v389_v14, %s1420_s26  ;;  %s1423_s26 = smov 48  }
  0xde   : > { %571 = vperm.xlu2 %1229, %v562_v32  }
  0xe0   : > { %566 = vperm.xlu0 %1230, %v561_v21  }
  0xe1   : > { %576 = vperm.xlu1 %1228, %v563_v31  }
 0x118   : > { %v417_v15 = vpop.permute.xlu2 %416 }
 0x120   : > { %v536_v18 = vpop.permute.xlu2 %535 }
 0x128   : > { %v1215_v23 = vpop.permute.xlu2 %1214 }
 0x129   : > { %v1217_v2 = vunpack.i.h.bf16 %v1215_v23  ;;  %v1216_v33 = vunpack.i.l.bf16 %v1215_v23 }
 0x12b   : > { %v459_v46 = vsel %vm458_vm12, %v1216_v33, %v1217_v2 }
 0x130   : > { %v1225_v41 = vpop.permute.xlu2 %1224 }
 0x131   : > { %v1227_v49 = vunpack.i.h.bf16 %v1225_v41  ;;  %v1226_v50 = vunpack.i.l.bf16 %v1225_v41  ;;  %v873_v41 = vld [vmem:[%s1727_s5 + $0x10] sm:$0xff] }
 0x132   : > { %v457_v16 = vpop.permute.xlu0 %456 }
 0x133   : > { %v1200_v17 = vpop.permute.xlu1 %1199  ;;  %v460_v47 = vsel %vm458_vm12, %v1217_v2, %v457_v16  ;;  %v360_v58 = vsel %vm359_vm15, %v1226_v50, %v1227_v49 }
 0x134   : > { %v1202_v36 = vunpack.i.h.bf16 %v1200_v17  ;;  %v1201_v37 = vunpack.i.l.bf16 %v1200_v17 }
 0x136   : > { %v419_v51 = vsel %vm418_vm13, %v1201_v37, %v1202_v36  ;;  %v420_v52 = vsel %vm418_vm13, %v1202_v36, %v417_v15 }
 0x138   : > { %v572_v15 = vpop.permute.xlu2 %571 }
 0x13a   : > { %v1210_v19 = vpop.permute.xlu0 %1209 }
 0x13b   : > { %v497_v20 = vpop.permute.xlu1 %496  ;;  %v1212_v27 = vunpack.i.h.bf16 %v1210_v19  ;;  %v1211_v28 = vunpack.i.l.bf16 %v1210_v19 }
 0x13d   : > { %v499_v38 = vsel %vm498_vm10, %v1211_v28, %v1212_v27  ;;  %v500_v39 = vsel %vm498_vm10, %v1212_v27, %v497_v20 }
 0x142   : > { %v1220_v25 = vpop.permute.xlu0 %1219 }
 0x143   : > { %v1205_v26 = vpop.permute.xlu1 %1204  ;;  %v1222_v44 = vunpack.i.h.bf16 %v1220_v25  ;;  %v1221_v45 = vunpack.i.l.bf16 %v1220_v25 }
 0x144   : > { %v1207_v29 = vunpack.i.h.bf16 %v1205_v26  ;;  %v1206_v30 = vunpack.i.l.bf16 %v1205_v26 }
 0x145   : > { %v400_v56 = vsel %vm399_vm14, %v1221_v45, %v1222_v44 }
 0x146   : > { %v538_v34 = vsel %vm537_vm7, %v1206_v30, %v1207_v29  ;;  %v539_v35 = vsel %vm537_vm7, %v1207_v29, %v536_v18  ;;  %vm747_vm7 = vcmask 523264  }
 0x147   : > { %598 = vmatpush.msra.mxu0 %v538_v34  ;;  %624 = vmatpush.msra.mxu1 %v539_v35 }
 0x149   : > { %599 = vmatpush.msra.mxu0 %v499_v38  ;;  %625 = vmatpush.msra.mxu1 %v500_v39 }
 0x14a   : > { %v358_v53 = vpop.permute.xlu0 %357 }
 0x14b   : > { %v398_v48 = vpop.permute.xlu1 %397  ;;  %600 = vmatpush.msra.mxu0 %v459_v46  ;;  %626 = vmatpush.msra.mxu1 %v460_v47  ;;  %v361_v59 = vsel %vm359_vm15, %v1227_v49, %v358_v53 }
 0x14c   : > { %v401_v57 = vsel %vm399_vm14, %v1222_v44, %v398_v48  ;;  %v872_v44 = vld [vmem:[%s1727_s5 + $0x8] sm:$0xff] }
 0x14d   : > { %601 = vmatpush.msra.mxu0 %v419_v51  ;;  %627 = vmatpush.msra.mxu1 %v420_v52 }
 0x14f   : > { %602 = vmatpush.msra.mxu0 %v400_v56  ;;  %628 = vmatpush.msra.mxu1 %v401_v57 }
 0x151   : > { %603 = vmatpush.msra.mxu0 %v360_v58  ;;  %629 = vmatpush.msra.mxu1 %v361_v59 }
 0x152   : > { %v567_v42 = vpop.permute.xlu0 %566 }
 0x153   : > { %604 = vmatpush.msra.mxu0 %v322_v60  ;;  %630 = vmatpush.msra.mxu1 %v323_v61  ;;  %v577_v8 = vpop.permute.xlu1 %576 }
 0x154   : > { %1077 = vmatmul.msk.f32.vlgmr.msra.gmra.mxu0 %vm579_vm0, %v544_v62  ;;  %1080 = vmatmul.msk.f32.vlgmr.msra.gmra.mxu1 %vm579_vm0, %v544_v62 }
 0x15c   : > { %1078 = vmatmul.msk.f32.gmra.mxu0 %vm579_vm0, %v545_v63  ;;  %1081 = vmatmul.msk.f32.gmra.mxu1 %vm579_vm0, %v545_v63 }
 0x164   : > { %1079 = vmatmul.msk.f32.gmra.mxu0 %vm579_vm0, %v546_v40  ;;  %1082 = vmatmul.msk.f32.gmra.mxu1 %vm579_vm0, %v546_v40 }
 0x1d1   : > { %v606_v1 = vpop.f32.mrf.mxu0  ;;  %v632_v3 = vpop.f32.mrf.mxu1 }
 0x1d2   : > { %v607_v4 = vadd.f32 %v606_v1, %v567_v42  ;;  %v633_v0 = vadd.f32 %v632_v3, %v567_v42 }
 0x1d4   : > { %v641_v5 = vmax.f32 %v607_v4, 0.0  ;;  %v642_v20 = vmax.f32 %v633_v0, 0.0 }
 0x1d6   : > { %663 = vrot.lane.b32.xlu0 %v641_v5, %s1423_s26 }
 0x1d9   : > { %v609_v6 = vpop.f32.mrf.mxu0  ;;  %v635_v7 = vpop.f32.mrf.mxu1 }
 0x1da   : > { %v636_v16 = vadd.f32 %v635_v7, %v572_v15  ;;  %v610_v17 = vadd.f32 %v609_v6, %v572_v15 }
 0x1dc   : > { %v644_v18 = vmax.f32 %v636_v16, 0.0  ;;  %v643_v19 = vmax.f32 %v610_v17, 0.0 }
 0x1e1   : > { %v612_v9 = vpop.f32.mrf.mxu0  ;;  %v638_v10 = vpop.f32.mrf.mxu1 }
 0x1e2   : > { %v613_v11 = vadd.f32 %v612_v9, %v577_v8  ;;  %v639_v12 = vadd.f32 %v638_v10, %v577_v8 }
 0x1e4   : > { %v645_v13 = vmax.f32 %v613_v11, 0.0  ;;  %v646_v14 = vmax.f32 %v639_v12, 0.0 }
 0x1e6   : > { %673 = vrot.lane.b32.xlu2 %v646_v14, %s1423_s26  ;;  %671 = vrot.lane.b32.xlu1 %v645_v13, %s1423_s26 }
 0x1ee   : > { %669 = vrot.lane.b32.xlu2 %v644_v18, %s1423_s26  ;;  %667 = vrot.lane.b32.xlu1 %v643_v19, %s1423_s26 }
 0x1f6   : > { %665 = vrot.lane.b32.xlu1 %v642_v20, %s1423_s26 }
 0x240   : > { %v674_v21 = vpop.permute.xlu2 %673 }
 0x241   : > { %697 = vst.msk [vmem:[#allocation4 + $0x40] sm:$0xff] %vm675_vm2, %v674_v21 }
 0x248   : > { %v670_v22 = vpop.permute.xlu2 %669  ;;  %v664_v23 = vpop.permute.xlu0 %663  ;;  %v815_v33 = vld [vmem:[#allocation4 + $0x40] sm:$0xff] }
 0x249   : > { %694 = vst.msk [vmem:[#allocation4 + $0x28] sm:$0xff] %vm675_vm2, %v670_v22 }
 0x24a   : > { %689 = vst.msk [vmem:[#allocation4] sm:$0xff] %vm688_vm3, %v664_v23 }
 0x250   : > { %v793_v24 = vld [vmem:[#allocation4 + $0x28] sm:$0xff] }
 0x251   : > { %801 = vrot.lane.b32.xlu1 %v793_v24, %s1423_s26  ;;  %v716_v37 = vld [vmem:[#allocation4] sm:$0xff] }
 0x258   : > { %v672_v25 = vpop.permute.xlu1 %671 }
 0x259   : > { %v1646_v26 = vsel %vm675_vm2, %v672_v25, %v674_v21  ;;  %695 = vst.msk [vmem:[#allocation4 + $0x30] sm:$0xff] %vm688_vm3, %v672_v25  ;;  %764 = vrot.lane.b32.xlu1 %v793_v24, %s1424_s30 }
 0x260   : > { %v668_v27 = vpop.permute.xlu1 %667  ;;  %v813_v28 = vld [vmem:[#allocation4 + $0x30] sm:$0xff] }
 0x261   : > { %v677_v29 = vsel %vm675_vm2, %v668_v27, %v670_v22  ;;  %692 = vst.msk [vmem:[#allocation4 + $0x18] sm:$0xff] %vm688_vm3, %v668_v27  ;;  %v1261_v30 = vpack.i.bf16 %v1646_v26, %v813_v28  ;;  %v850_v27 = vld [vmem:[%s1726_s4] sm:$0xff] }
 0x262   : > { %v1236_v31 = vpack.i.bf16 %v793_v24, %v677_v29 }
 0x263   : > { %1262 = vrot.lane.b32.xlu1 %v1261_v30, %s1425_s17 }
 0x264   : > { %1237 = vrot.lane.b32.xlu2 %v1236_v31, %s1425_s17  ;;  %v852_v31 = vld [vmem:[%s1726_s4 + $0x10] sm:$0xff] }
 0x268   : > { %v666_v32 = vpop.permute.xlu1 %665  ;;  %v791_v2 = vld [vmem:[#allocation4 + $0x18] sm:$0xff] }
 0x269   : > { %v676_v34 = vsel %vm675_vm2, %v664_v23, %v666_v32  ;;  %691 = vst.msk [vmem:[#allocation4 + $0x10] sm:$0xff] %vm675_vm2, %v666_v32  ;;  %v1231_v35 = vpack.i.bf16 %v677_v29, %v791_v2  ;;  %v1246_v36 = vpack.i.bf16 %v791_v2, %v815_v33 }
 0x26a   : > { %v1266_v38 = vpack.i.bf16 %v676_v34, %v716_v37 }
 0x26b   : > { %1232 = vrot.lane.b32.xlu0 %v1231_v35, %s1423_s26 }
 0x26c   : > { %1247 = vrot.lane.b32.xlu2 %v1246_v36, %s1425_s17  ;;  %1267 = vrot.lane.b32.xlu1 %v1266_v38, %s1425_s17 }
 0x270   : > { %v700_v39 = vld [vmem:[#allocation4 + $0x10] sm:$0xff] }
 0x273   : > { %1242 = vrot.lane.b32.xlu0 %v1231_v35, %s1424_s30 }
 0x274   : > { %1252 = vrot.lane.b32.xlu2 %v1261_v30, %s1426_s19  ;;  %708 = vrot.lane.b32.xlu1 %v700_v39, %s1427_s27  ;;  %v851_v30 = vld [vmem:[%s1726_s4 + $0x8] sm:$0xff] }
 0x27b   : > { %841 = vrot.lane.b32.xlu0 %v815_v33, %s1426_s19 }
 0x27c   : > { %1257 = vrot.lane.b32.xlu2 %v1266_v38, %s1428_s7  ;;  %886 = vperm.xlu1 %1228, %v873_v41  }
 0x283   : > { %745 = vrot.lane.b32.xlu0 %v700_v39, %s1428_s7 }
 0x284   : > { %726 = vrot.lane.b32.xlu2 %v700_v39, %s1425_s17  ;;  %s1356_s17 = scalar_lea.hbm %s1728_s6, 32 }
 0x285   : > { %p1358_p10 = scmp.lt.s32.totalorder %s1356_s17, %s1352_s20 }
 0x287   : > { %p1359_p2 = por %p1358_p10, %p1357_p9 }
 0x289   : > { %p1360_p11 = pnand %p1359_p2, %p1355_p8 }
 0x28b   : > { %1272 = vrot.lane.b32.xlu0 %v1266_v38, %s1427_s27  ;;  %s1070_s27 = sshll.u32 %s1557_s16, 4 }
 0x28c   : > { %876 = vperm.xlu2 %1229, %v871_v43   ;;  %s284_s25 = scalar_lea.vmem [#allocation11], %s1070_s27 }
 0x28d   : > { %s977_s10 = sshll.u32 %s284_s25, 4  ;;  %s978_s10 = int_to_ptr.vmem [resolvable:$true] %s977_s10 }
 0x293   : > { %881 = vperm.xlu0 %1230, %v872_v44  }
 0x2be   : > { %v1238_v45 = vpop.permute.xlu2 %1237 }
 0x2bf   : > { %v1239_v61 = vunpack.i.l.bf16 %v1238_v45  ;;  %v1240_v16 = vunpack.i.h.bf16 %v1238_v45 }
 0x2c1   : > { %v786_v19 = vsel %vm728_vm5, %v1239_v61, %v1240_v16 }
 0x2c3   : > { %v802_v46 = vpop.permute.xlu1 %801 }
 0x2c6   : > { %v1248_v47 = vpop.permute.xlu2 %1247 }
 0x2c7   : > { %v1250_v58 = vunpack.i.h.bf16 %v1248_v47  ;;  %v1249_v13 = vunpack.i.l.bf16 %v1248_v47 }
 0x2c9   : > { %v785_v63 = vsel %vm728_vm5, %v1250_v58, %v1239_v61 }
 0x2cb   : > { %v765_v48 = vpop.permute.xlu1 %764 }
 0x2ce   : > { %v1253_v49 = vpop.permute.xlu2 %1252 }
 0x2cf   : > { %v1255_v50 = vunpack.i.h.bf16 %v1253_v49  ;;  %v1254_v51 = vunpack.i.l.bf16 %v1253_v49 }
 0x2d1   : > { %v844_v52 = vsel %vm843_vm4, %v1254_v51, %v1255_v50 }
 0x2d2   : > { %906 = vmatpush.msra.mxu2 %v844_v52 }
 0x2d5   : > { %v1263_v53 = vpop.permute.xlu1 %1262 }
 0x2d6   : > { %v1265_v54 = vunpack.i.h.bf16 %v1263_v53  ;;  %v1264_v55 = vunpack.i.l.bf16 %v1263_v53  ;;  %v1258_v40 = vpop.permute.xlu2 %1257 }
 0x2d7   : > { %v1260_v3 = vunpack.i.h.bf16 %v1258_v40  ;;  %v1259_v4 = vunpack.i.l.bf16 %v1258_v40 }
 0x2d8   : > { %v825_v56 = vsel %vm728_vm5, %v1264_v55, %v1265_v54  ;;  %v826_v15 = vsel %vm728_vm5, %v1265_v54, %v1249_v13 }
 0x2d9   : > { %907 = vmatpush.msra.mxu2 %v825_v56  ;;  %v748_v10 = vsel %vm747_vm7, %v1259_v4, %v1260_v3 }
 0x2db   : > { %908 = vmatpush.msra.mxu2 %v813_v28 }
 0x2dd   : > { %v1233_v57 = vpop.permute.xlu0 %1232 }
 0x2de   : > { %v1235_v59 = vunpack.i.h.bf16 %v1233_v57  ;;  %v1234_v60 = vunpack.i.l.bf16 %v1233_v57  ;;  %v1268_v42 = vpop.permute.xlu1 %1267  ;;  %v727_v21 = vpop.permute.xlu2 %726 }
 0x2df   : > { %v1270_v7 = vunpack.i.h.bf16 %v1268_v42  ;;  %v1269_v8 = vunpack.i.l.bf16 %v1268_v42 }
 0x2e0   : > { %v803_v62 = vsel %vm675_vm2, %v1234_v60, %v1235_v59  ;;  %v804_v17 = vsel %vm675_vm2, %v1235_v59, %v802_v46 }
 0x2e1   : > { %909 = vmatpush.msra.mxu2 %v803_v62  ;;  %v729_v11 = vsel %vm728_vm5, %v1269_v8, %v1270_v7  ;;  %v730_v22 = vsel %vm728_vm5, %v1270_v7, %v727_v21 }
 0x2e3   : > { %910 = vmatpush.msra.mxu2 %v785_v63 }
 0x2e5   : > { %v1243_v1 = vpop.permute.xlu0 %1242 }
 0x2e6   : > { %v1245_v5 = vunpack.i.h.bf16 %v1243_v1  ;;  %v1244_v6 = vunpack.i.l.bf16 %v1243_v1  ;;  %v877_v38 = vpop.permute.xlu2 %876 }
 0x2e8   : > { %v767_v9 = vsel %vm766_vm6, %v1244_v6, %v1245_v5  ;;  %v768_v0 = vsel %vm766_vm6, %v1245_v5, %v765_v48 }
 0x2e9   : > { %911 = vmatpush.msra.mxu2 %v767_v9 }
 0x2eb   : > { %912 = vmatpush.msra.mxu2 %v748_v10 }
 0x2ed   : > { %v842_v12 = vpop.permute.xlu0 %841  ;;  %913 = vmatpush.msra.mxu2 %v729_v11 }
 0x2ee   : > { %v845_v14 = vsel %vm843_vm4, %v1255_v50, %v842_v12 }
 0x2ef   : > { %932 = vmatpush.msra.mxu3 %v845_v14 }
 0x2f1   : > { %933 = vmatpush.msra.mxu3 %v826_v15 }
 0x2f3   : > { %934 = vmatpush.msra.mxu3 %v1646_v26  ;;  %v709_v26 = vpop.permute.xlu1 %708 }
 0x2f5   : > { %v746_v18 = vpop.permute.xlu0 %745  ;;  %935 = vmatpush.msra.mxu3 %v804_v17 }
 0x2f6   : > { %v749_v20 = vsel %vm747_vm7, %v1260_v3, %v746_v18 }
 0x2f7   : > { %936 = vmatpush.msra.mxu3 %v786_v19 }
 0x2f9   : > { %937 = vmatpush.msra.mxu3 %v768_v0 }
 0x2fb   : > { %938 = vmatpush.msra.mxu3 %v749_v20  ;;  %v887_v43 = vpop.permute.xlu1 %886 }
 0x2fd   : > { %v1273_v23 = vpop.permute.xlu0 %1272  ;;  %939 = vmatpush.msra.mxu3 %v730_v22 }
 0x2fe   : > { %v1275_v24 = vunpack.i.h.bf16 %v1273_v23  ;;  %v1274_v25 = vunpack.i.l.bf16 %v1273_v23 }
 0x300   : > { %v710_v28 = vsel %vm649_vm1, %v1274_v25, %v1275_v24  ;;  %v711_v29 = vsel %vm649_vm1, %v1275_v24, %v709_v26 }
 0x301   : > { %914 = vmatpush.msra.mxu2 %v710_v28  ;;  %940 = vmatpush.msra.mxu3 %v711_v29 }
 0x302   : > { %1083 = vmatmul.msk.f32.vlgmr.msra.gmra.mxu2 %vm889_vm8, %v850_v27  ;;  %1086 = vmatmul.msk.f32.vlgmr.msra.gmra.mxu3 %vm889_vm8, %v850_v27 }
 0x305   : > { %v882_v35 = vpop.permute.xlu0 %881 }
 0x30a   : > { %1084 = vmatmul.msk.f32.gmra.mxu2 %vm889_vm8, %v851_v30  ;;  %1087 = vmatmul.msk.f32.gmra.mxu3 %vm889_vm8, %v851_v30 }
 0x312   : > { %1085 = vmatmul.msk.f32.gmra.mxu2 %vm889_vm8, %v852_v31  ;;  %1088 = vmatmul.msk.f32.gmra.mxu3 %vm889_vm8, %v852_v31 }
 0x385   : > { %v916_v32 = vpop.f32.mrf.mxu2  ;;  %v942_v2 = vpop.f32.mrf.mxu3 }
 0x386   : > { %v917_v39 = vadd.f32 %v916_v32, %v877_v38  ;;  %v943_v41 = vadd.f32 %v942_v2, %v877_v38 }
 0x388   : > { %v951_v48 = vmax.f32 %v917_v39, 0.0  ;;  %v952_v49 = vmax.f32 %v943_v41, 0.0 }
 0x38d   : > { %v919_v33 = vpop.f32.mrf.mxu2  ;;  %v945_v34 = vpop.f32.mrf.mxu3 }
 0x38e   : > { %v920_v36 = vadd.f32 %v919_v33, %v882_v35  ;;  %v946_v37 = vadd.f32 %v945_v34, %v882_v35 }
 0x390   : > { %v953_v44 = vmax.f32 %v920_v36, 0.0  ;;  %v954_v45 = vmax.f32 %v946_v37, 0.0 }
 0x392   : > { %v957_v52 = vadd.f32 %v953_v44, %v951_v48  ;;  %v958_v53 = vadd.f32 %v954_v45, %v952_v49 }
 0x395   : > { %v922_v46 = vpop.f32.mrf.mxu2  ;;  %v948_v47 = vpop.f32.mrf.mxu3 }
 0x396   : > { %v923_v50 = vadd.f32 %v922_v46, %v887_v43  ;;  %v949_v51 = vadd.f32 %v948_v47, %v887_v43 }
 0x398   : > { %v955_v54 = vmax.f32 %v923_v50, 0.0  ;;  %v956_v55 = vmax.f32 %v949_v51, 0.0 }
 0x39a   : > { %v959_v56 = vadd.f32 %v957_v52, %v955_v54  ;;  %v960_v57 = vadd.f32 %v958_v53, %v956_v55 }
 0x39c   : > { %961 = vst [vmem:[%s284_s25] sm:$0xff] %v959_v56 }
 0x39d   : > { %962 = vst [vmem:[%s284_s25 + $0x8] sm:$0xff] %v960_v57 }
 0x39e   : > { %1363 = shalt.err (!%p1360_p11)
}
 0x39f   : > { %1102 = dma.vmem_to_hbm [thread:$0]  (%p1530_p3), %s978_s10, 256, %s980_s12, %s964_s13  }
 0x3a0 PF: > { %s991_s16 = sand.u32 1, %s1394_s21   ;;  %p1734_p12 = scmp.ge.s32.totalorder %s1406_s24, 2 }
 0x3a1   : > { %s992_s8 = scalar_lea.sflag [#allocation8], %s991_s16 }
 0x3a2   : > { %p1113_p13 = pnand %p1734_p12, %p1499_p6 }
 0x3a4   : > { %p1114_p0 = pneg %p1113_p13 }
 0x3a6   : > { %1389 = dma.done.wait (%p1114_p0), %s992_s8, 256  }
 0x3a7   : > { %1391 = vsyncadd (%p1114_p0), %s992_s8, 4294967040  ;;  %p20_p5 = scmp.ge.s32.totalorder %s1517_s11, 4   ;;  %s1735_s21 = smov %s1398_s22 }
 0x3a8   : > { %s1736_s22 = smov %s1402_s23  ;;  %s1737_s23 = smov %s1526_s14 }
 0x3a9   : > { %s1738_s24 = smov %s1517_s11  ;;  %22 = sbr.rel (!%p20_p5) target bundleno = 6 (0x6), region = 93 }
 0x3ae   :  { %998 = vsyncpa [#allocation7], 1 }
 0x3af   :  { %1000 = vsyncpa [#allocation7 + $0x1], 1 }
 0x3b0   :  { %1001 = vsyncpa [#allocation10], 1 }
 0x3b1   :  { %1002 = vsyncpa [#allocation8], 1 }
 0x3b2   :  { %1004 = vsyncpa [#allocation8 + $0x1], 1 }

</bundles_post_ra>
